<compile_context>
chip_gen: v5e
topology: v5e:2x2
jax: 0.10.0
libtpu: 0.0.40
codegen_flags: <defaults>
</compile_context>

<pallas_src>
import functools

import jax
import jax.numpy as jnp
from jax.experimental import pallas as pl
from jax.experimental.pallas import tpu as pltpu

_LANES = 128
_MAX_BLOCK_ROWS = 2048   # 2048 x 128 f32 = 1 MiB per block; x2 inputs x2 buffers ~= 4 MiB


def _round_up(x, m):
    return ((x + m - 1) // m) * m


def _focus_metrics_kernel(pred_reg_ref, target_reg_ref, pred_cls_ref,
                          target_cls_ref, l1_sum_ref, correct_ref,
                          class_pred_ref):
    step = pl.program_id(0)

    @pl.when(step == 0)
    def _init_and_classify():
        # ---- init L1 accumulator ----
        l1_sum_ref[0] = jnp.float32(0.0)

        # ---- argmax over classes (first max index, like torch.argmax) ----
        # pred_cls arrives transposed as (C, B): class axis on sublanes, batch
        # on lanes, so the reduction yields a lane-dense (1, B) row directly.
        cls = pred_cls_ref[...].astype(jnp.float32)                   # (C, B)
        C, B = cls.shape
        max_val = jnp.max(cls, axis=0, keepdims=True)                 # (1, B)
        row_ids = jax.lax.broadcasted_iota(jnp.int32, (C, B), dimension=0)
        masked = jnp.where(cls == max_val, row_ids, jnp.int32(C))
        class_pred = jnp.min(masked, axis=0, keepdims=True)           # (1, B)
        # TODO(synk): torch.argmax returns the NaN position for NaN inputs;
        #             this returns C for an all-NaN column.
        class_pred_ref[...] = class_pred
        correct_ref[0] = jnp.sum(
            (class_pred == target_cls_ref[...]).astype(jnp.int32))

    # ---- L1 partial sum for this block ----
    # Inputs are DMA'd in native dtype; cast to f32 in-register (mandatory on
    # v5e which has no bf16 VPU, unbiased accumulation everywhere).
    a = pred_reg_ref[...].astype(jnp.float32)
    b = target_reg_ref[...].astype(jnp.float32)
    l1_sum_ref[0] = l1_sum_ref[0] + jnp.sum(jnp.abs(a - b))


@functools.partial(jax.jit, static_argnames=("mode",))
def _focus_metrics_device(prediction_reg, prediction_cls, target_reg,
                          target_cls, mode="train"):
    pred_flat = prediction_reg.reshape(-1)
    tgt_flat = target_reg.reshape(-1)
    assert pred_flat.shape == tgt_flat.shape, (pred_flat.shape, tgt_flat.shape)
    n = pred_flat.shape[0]

    # Pack the regression vectors into sublane/lane-dense 2D slabs of 128-wide
    # rows; rows padded up to a multiple of the block height. Both inputs are
    # zero-padded identically so padded elements contribute 0 to sum(|diff|);
    # the mean divides by the true n afterwards.
    rows = _round_up(n, _LANES) // _LANES
    block_rows = min(_MAX_BLOCK_ROWS, _round_up(rows, 8))
    padded_rows = _round_up(rows, block_rows)
    padded_n = padded_rows * _LANES
    pred_2d = jnp.pad(pred_flat, (0, padded_n - n)).reshape(padded_rows, _LANES)
    tgt_2d = jnp.pad(tgt_flat, (0, padded_n - n)).reshape(padded_rows, _LANES)
    num_blocks = padded_rows // block_rows

    B, C = prediction_cls.shape
    pred_cls_t = jnp.transpose(prediction_cls, (1, 0))       # (C, B): batch lane-dense
    target_cls_row = target_cls.reshape(1, B).astype(jnp.int32)

    l1_sum, correct, class_pred_row = pl.pallas_call(
        _focus_metrics_kernel,
        out_shape=(
            jax.ShapeDtypeStruct((1,), jnp.float32),    # sum(|diff|)
            jax.ShapeDtypeStruct((1,), jnp.int32),      # correct count
            jax.ShapeDtypeStruct((1, B), jnp.int32),    # class_pred (lane-dense)
        ),
        grid=(num_blocks,),
        in_specs=[
            pl.BlockSpec((block_rows, _LANES), lambda r: (r, 0)),  # pred_reg tiles
            pl.BlockSpec((block_rows, _LANES), lambda r: (r, 0)),  # target_reg tiles
            pl.BlockSpec((C, B), lambda r: (0, 0)),                # pred_cls (full, resident)
            pl.BlockSpec((1, B), lambda r: (0, 0)),                # target_cls (full, resident)
        ],
        out_specs=(
            pl.BlockSpec(memory_space=pltpu.SMEM),
            pl.BlockSpec(memory_space=pltpu.SMEM),
            pl.BlockSpec((1, B), lambda r: (0, 0)),
        ),
        compiler_params=pltpu.CompilerParams(
            dimension_semantics=("arbitrary",),          # reduction over reg blocks
            vmem_limit_bytes=32 * 1024 * 1024,           # explicit, safe for v7x's 64 MiB
        ),
    )(pred_2d, tgt_2d, pred_cls_t, target_cls_row)

    l1_loss = l1_sum[0] / jnp.float32(n)
    class_pred = class_pred_row[0]                       # (B,)

    if mode == "test":
        # torch.median(class_pred, dim=0) -> lower median (plain-JAX glue).
        cp_med = jnp.sort(class_pred)[(B - 1) // 2]
        correct_pred = jnp.sum(
            (cp_med == target_cls.astype(jnp.int32)).astype(jnp.int32))
    else:
        correct_pred = correct[0]

    return l1_loss, correct_pred, class_pred


def focus_metrics_multi(prediction_reg, prediction_cls, target_reg, target_cls,
                        mode="train"):
    """JAX/Pallas equivalent of FocusMetricsMulti.forward.

    Returns JAX scalars for 'correct_pred' / 'l1_loss' (no per-call host sync);
    convert with int()/float() outside the hot path if Python values are needed.
    """
    l1_loss, correct_pred, _ = _focus_metrics_device(
        prediction_reg, prediction_cls, target_reg, target_cls, mode=mode)
    return {"correct_pred": correct_pred,
            "l1_loss": l1_loss,
            "total": int(target_cls.shape[0])}


if __name__ == "__main__":
    key = jax.random.PRNGKey(0)
    k1, k2, k3, k4 = jax.random.split(key, 4)

    B, C = 8, 16
    prediction_reg = jax.random.normal(k1, (B, 1), dtype=jnp.float32)
    prediction_cls = jax.random.normal(k2, (B, C), dtype=jnp.float32)
    target_reg = jax.random.normal(k3, (B,), dtype=jnp.float32)
    target_cls = jax.random.randint(k4, (B,), 0, C, dtype=jnp.int32)

    # ---- train mode ----
    out = focus_metrics_multi(prediction_reg, prediction_cls, target_reg,
                              target_cls, mode="train")
    jax.block_until_ready((out["correct_pred"], out["l1_loss"]))

    ref_l1 = float(jnp.mean(jnp.abs(prediction_reg.reshape(-1) - target_reg)))
    ref_pred = jnp.argmax(prediction_cls, axis=-1).astype(jnp.int32)
    ref_correct = int(jnp.sum(ref_pred == target_cls))
    assert abs(float(out["l1_loss"]) - ref_l1) < 1e-5, (float(out["l1_loss"]), ref_l1)
    assert int(out["correct_pred"]) == ref_correct, (int(out["correct_pred"]), ref_correct)
    assert out["total"] == B

    # ---- test mode (median over batch of argmax predictions) ----
    out_t = focus_metrics_multi(prediction_reg, prediction_cls, target_reg,
                                target_cls, mode="test")
    ref_med = jnp.sort(ref_pred)[(B - 1) // 2]
    ref_correct_t = int(jnp.sum(ref_med == target_cls))
    assert abs(float(out_t["l1_loss"]) - ref_l1) < 1e-5
    assert int(out_t["correct_pred"]) == ref_correct_t

    # ---- larger bf16 regression length: exercises the tiled multi-block
    #      reduction and the native-dtype (bf16) DMA path ----
    kN1, kN2 = jax.random.split(k1)
    N_big = 300_000
    big_pred = jax.random.normal(kN1, (N_big, 1), dtype=jnp.bfloat16)
    big_tgt = jax.random.normal(kN2, (N_big,), dtype=jnp.bfloat16)
    out_big = focus_metrics_multi(big_pred, prediction_cls, big_tgt, target_cls,
                                  mode="train")
    ref_big = float(jnp.mean(jnp.abs(big_pred.reshape(-1).astype(jnp.float32)
                                     - big_tgt.astype(jnp.float32))))
    assert abs(float(out_big["l1_loss"]) - ref_big) <= 2e-3 * max(1.0, abs(ref_big))

    print("KERNEL_OK")
</pallas_src>

<mosaic_0001>
module attributes {stable_mosaic.version = 11 : i64} {
  func.func @_focus_metrics_kernel(%arg0: i32, %arg1: memref<8x128xf32, #tpu.memory_space<vmem>>, %arg2: memref<8x128xf32, #tpu.memory_space<vmem>>, %arg3: memref<16x8xf32, #tpu.memory_space<vmem>>, %arg4: memref<1x8xi32, #tpu.memory_space<vmem>>, %arg5: memref<1xf32, #tpu.memory_space<smem>>, %arg6: memref<1xi32, #tpu.memory_space<smem>>, %arg7: memref<1x8xi32, #tpu.memory_space<vmem>>) attributes {dimension_semantics = [#tpu.dimension_semantics<arbitrary>], iteration_bounds = array<i64: 1>, scalar_prefetch = 0 : i64, scratch_operands = 0 : i64, tpu.core_type = #tpu.core_type<tc>, window_params = [{transform_indices = @transform_0, window_bounds = array<i64: 8, 128>}, {transform_indices = @transform_1, window_bounds = array<i64: 8, 128>}, {pipeline_mode = #tpu.pipeline_mode<synchronous>, transform_indices = @transform_2, window_bounds = array<i64: 16, 8>}, {pipeline_mode = #tpu.pipeline_mode<synchronous>, transform_indices = @transform_3, window_bounds = array<i64: 1, 8>}, {transform_indices = @transform_4, window_bounds = array<i64: 1>}, {transform_indices = @transform_5, window_bounds = array<i64: 1>}, {pipeline_mode = #tpu.pipeline_mode<synchronous>, transform_indices = @transform_6, window_bounds = array<i64: 1, 8>}]} {
    %c0_i32 = arith.constant 0 : i32
    %0 = arith.cmpi eq, %arg0, %c0_i32 : i32
    %1 = arith.extui %0 : i1 to i32
    %c0_i32_0 = arith.constant 0 : i32
    %2 = arith.cmpi ne, %1, %c0_i32_0 : i32
    scf.if %2 {
      %cst_6 = arith.constant 0.000000e+00 : f32
      %c0_7 = arith.constant 0 : index
      %14 = memref.load %arg5[%c0_7] : memref<1xf32, #tpu.memory_space<smem>>
      memref.store %cst_6, %arg5[%c0_7] : memref<1xf32, #tpu.memory_space<smem>>
      %c0_8 = arith.constant 0 : index
      %c0_9 = arith.constant 0 : index
      %15 = vector.load %arg3[%c0_8, %c0_9] : memref<16x8xf32, #tpu.memory_space<vmem>>, vector<16x8xf32>
      %cst_10 = arith.constant dense<0xFF800000> : vector<8xf32>
      %16 = vector.multi_reduction <maximumf>, %15, %cst_10 [0] : vector<16x8xf32> to vector<8xf32>
      %17 = vector.shape_cast %16 : vector<8xf32> to vector<1x8xf32>
      %18 = tpu.iota {dimensions = array<i32: 0>} : vector<16x8xi32>
      %19 = vector.broadcast %17 : vector<1x8xf32> to vector<16x8xf32>
      %20 = arith.cmpf oeq, %15, %19 : vector<16x8xf32>
      %c16_i32 = arith.constant 16 : i32
      %21 = vector.broadcast %c16_i32 : i32 to vector<16x8xi32>
      %22 = arith.select %20, %18, %21 : vector<16x8xi1>, vector<16x8xi32>
      %cst_11 = arith.constant dense<2147483647> : vector<8xi32>
      %23 = vector.multi_reduction <minsi>, %22, %cst_11 [0] : vector<16x8xi32> to vector<8xi32>
      %24 = vector.shape_cast %23 : vector<8xi32> to vector<1x8xi32>
      %c0_12 = arith.constant 0 : index
      %c0_13 = arith.constant 0 : index
      %25 = vector.load %arg7[%c0_12, %c0_13] : memref<1x8xi32, #tpu.memory_space<vmem>>, vector<1x8xi32>
      tpu.vector_store %arg7[%c0_12, %c0_13], %24 {strides = array<i32>} : memref<1x8xi32, #tpu.memory_space<vmem>>, vector<1x8xi32>,
      %c0_14 = arith.constant 0 : index
      %c0_15 = arith.constant 0 : index
      %26 = vector.load %arg4[%c0_14, %c0_15] : memref<1x8xi32, #tpu.memory_space<vmem>>, vector<1x8xi32>
      %27 = arith.cmpi eq, %24, %26 : vector<1x8xi32>
      %28 = arith.extui %27 : vector<1x8xi1> to vector<1x8xi32>
      %29 = vector.shape_cast %28 : vector<1x8xi32> to vector<1x1x8xi32>
      %cst_16 = arith.constant dense<0> : vector<1xi32>
      %30 = vector.multi_reduction <add>, %29, %cst_16 [1, 2] : vector<1x1x8xi32> to vector<1xi32>
      %31 = vector.shape_cast %30 : vector<1xi32> to vector<1x1x1xi32>
      %32 = vector.extract %31[0, 0, 0] : i32 from vector<1x1x1xi32>
      %c0_17 = arith.constant 0 : index
      %33 = memref.load %arg6[%c0_17] : memref<1xi32, #tpu.memory_space<smem>>
      memref.store %32, %arg6[%c0_17] : memref<1xi32, #tpu.memory_space<smem>>
    } else {
    }
    %c0 = arith.constant 0 : index
    %c0_1 = arith.constant 0 : index
    %3 = vector.load %arg1[%c0, %c0_1] : memref<8x128xf32, #tpu.memory_space<vmem>>, vector<8x128xf32>
    %c0_2 = arith.constant 0 : index
    %c0_3 = arith.constant 0 : index
    %4 = vector.load %arg2[%c0_2, %c0_3] : memref<8x128xf32, #tpu.memory_space<vmem>>, vector<8x128xf32>
    %c0_4 = arith.constant 0 : index
    %5 = memref.load %arg5[%c0_4] : memref<1xf32, #tpu.memory_space<smem>>
    %6 = arith.subf %3, %4 : vector<8x128xf32>
    %7 = math.absf %6 : vector<8x128xf32>
    %8 = vector.shape_cast %7 : vector<8x128xf32> to vector<1x8x128xf32>
    %cst = arith.constant dense<0.000000e+00> : vector<1xf32>
    %9 = vector.multi_reduction <add>, %8, %cst [1, 2] : vector<1x8x128xf32> to vector<1xf32>
    %10 = vector.shape_cast %9 : vector<1xf32> to vector<1x1x1xf32>
    %11 = vector.extract %10[0, 0, 0] : f32 from vector<1x1x1xf32>
    %12 = arith.addf %5, %11 : f32
    %c0_5 = arith.constant 0 : index
    %13 = memref.load %arg5[%c0_5] : memref<1xf32, #tpu.memory_space<smem>>
    memref.store %12, %arg5[%c0_5] : memref<1xf32, #tpu.memory_space<smem>>
    return
  }
  func.func @transform_0(%arg0: i32) -> (i32, i32) {
    %c0_i32 = arith.constant 0 : i32
    %c0_i32_0 = arith.constant 0 : i32
    return %arg0, %c0_i32 : i32, i32
  }
  func.func @transform_1(%arg0: i32) -> (i32, i32) {
    %c0_i32 = arith.constant 0 : i32
    %c0_i32_0 = arith.constant 0 : i32
    return %arg0, %c0_i32 : i32, i32
  }
  func.func @transform_2(%arg0: i32) -> (i32, i32) {
    %c0_i32 = arith.constant 0 : i32
    %c0_i32_0 = arith.constant 0 : i32
    %c0_i32_1 = arith.constant 0 : i32
    return %c0_i32, %c0_i32_0 : i32, i32
  }
  func.func @transform_3(%arg0: i32) -> (i32, i32) {
    %c0_i32 = arith.constant 0 : i32
    %c0_i32_0 = arith.constant 0 : i32
    %c0_i32_1 = arith.constant 0 : i32
    return %c0_i32, %c0_i32_0 : i32, i32
  }
  func.func @transform_4(%arg0: i32) -> i32 {
    %c0_i32 = arith.constant 0 : i32
    %c0_i32_0 = arith.constant 0 : i32
    return %c0_i32 : i32
  }
  func.func @transform_5(%arg0: i32) -> i32 {
    %c0_i32 = arith.constant 0 : i32
    %c0_i32_0 = arith.constant 0 : i32
    return %c0_i32 : i32
  }
  func.func @transform_6(%arg0: i32) -> (i32, i32) {
    %c0_i32 = arith.constant 0 : i32
    %c0_i32_0 = arith.constant 0 : i32
    %c0_i32_1 = arith.constant 0 : i32
    return %c0_i32, %c0_i32_0 : i32, i32
  }
}

</mosaic_0001>

<bundles_post_ra>
// kernel: _focus_metrics_device.1
= control target key start
LH: loop header
LB: loop body
LE: loop exit
PB: predicated region body
PF: predicated region fallthrough
CT: control target
= control target key end

     0   :  { %12 = vsyncpa [#allocation4], 0  ;;  %s280_s0 = inlined_call_operand.vmem [shape: f32[8,128], index: 0, kind: input, shape index: {}]   ;;  %s281_s1 = inlined_call_operand.vmem [shape: f32[8,128], index: 1, kind: input, shape index: {}]   ;;  %s282_s2 = inlined_call_operand.vmem [shape: f32[16,8], index: 2, kind: input, shape index: {}]   ;;  %s283_s3 = inlined_call_operand.vmem [shape: s32[1,8], index: 3, kind: input, shape index: {}]   ;;  %s284_s4 = inlined_call_operand.hbm [shape: f32[1], index: 4, kind: output, shape index: {0}]   ;;  %s285_s5 = inlined_call_operand.hbm [shape: s32[1], index: 5, kind: output, shape index: {1}]   ;;  %s286_s6 = inlined_call_operand.hbm [shape: s32[1,8], index: 6, kind: output, shape index: {2}]  }
   0x1   :  { %13 = vsyncpa [#allocation6], 0  ;;  %v29_v0 = vld [vmem:[%s282_s2] sm:$0xff]  ;;  %v30_v1 = vld [vmem:[%s282_s2 + $0x8] sm:$0xff]  ;;  %vm31_vm0 = vcmask 64512  }
   0x2   :  { %v32_v2 = vsel %vm31_vm0, %v29_v0, -inf  ;;  %v33_v3 = vsel %vm31_vm0, %v30_v1, -inf }
   0x3   :  { %14 = vsyncpa [#allocation3], 0  ;;  %v34_v4 = vmax.f32 %v32_v2, %v33_v3  ;;  %v41_v6 = vlaneseq  ;;  %v88_v9 = vld [vmem:[%s280_s0] sm:$0xff]  ;;  %vm61_vm7 = vcmask 57344   ;;  %v213_v30 = vmov 0   ;;  %s214_s2 = smov [#allocation7]  }
   0x4   :  { %v89_v10 = vld [vmem:[%s281_s1] sm:$0xff]  ;;  %s128_s29 = sshll.u32 %s214_s2, 4  ;;  %s110_s9 = sshll.u32 %s284_s4, 4  ;;  %s129_s29 = int_to_ptr.vmem [resolvable:$true] %s128_s29  ;;  %s111_s9 = int_to_ptr.hbm [resolvable:$true] %s110_s9 }
   0x5   :  { %v35_v5 = vrot.slane %v34_v4, 4  ;;  %v42_v11 = vshrl.u32 %v41_v6, 7  ;;  %v91_v12 = vsub.f32 %v88_v9, %v89_v10  ;;  %v63_v28 = vld [vmem:[%s283_s3] sm:$0x1]  ;;  %s130_s3 = sshll.u32 %s286_s6, 4  ;;  %s119_s12 = sshll.u32 %s285_s5, 4  ;;  %s131_s3 = int_to_ptr.hbm [resolvable:$true] %s130_s3  ;;  %s120_s12 = int_to_ptr.hbm [resolvable:$true] %s119_s12 }
   0x6   :  { %s215_s15 = smov [#allocation5]   ;;  %s216_s16 = smov [#allocation2]  }
   0x7   :  { %v36_v7 = vmax.f32 %v34_v4, %v35_v5  ;;  %v92_v14 = vand.u32 2147483647, %v91_v12  ;;  %v43_v16 = vadd.s32 8, %v42_v11 }
   0x9   :  { %v37_v8 = vrot.slane %v36_v7, 2  ;;  %93 = vadd.xlane.f32.xlu1 %v92_v14 }
   0xb   :  { %v38_v13 = vmax.f32 %v36_v7, %v37_v8 }
   0xd   :  { %v39_v15 = vrot.slane %v38_v13, 1 }
   0xf   :  { %v40_v17 = vmax.f32 %v38_v13, %v39_v15 }
  0x11   :  { %vm44_vm1 = vcmp.eq.f32.partialorder %v29_v0, %v40_v17  ;;  %vm45_vm2 = vcmp.eq.f32.partialorder %v30_v1, %v40_v17 }
  0x12   :  { %v46_v18 = vsel %vm44_vm1, %v42_v11, 16  ;;  %v47_v19 = vsel %vm45_vm2, %v43_v16, 16 }
  0x13   :  { %v48_v20 = vsel %vm31_vm0, %v46_v18, 2147483647  ;;  %v49_v21 = vsel %vm31_vm0, %v47_v19, 2147483647 }
  0x14   :  { %vm50_vm3 = vcmp.lt.s32.totalorder %v48_v20, %v49_v21 }
  0x15   :  { %v51_v22 = vsel %vm50_vm3, %v48_v20, %v49_v21 }
  0x16   :  { %v52_v23 = vrot.slane %v51_v22, 4 }
  0x18   :  { %vm53_vm4 = vcmp.lt.s32.totalorder %v51_v22, %v52_v23 }
  0x19   :  { %v54_v24 = vsel %vm53_vm4, %v51_v22, %v52_v23 }
  0x1a   :  { %v55_v25 = vrot.slane %v54_v24, 2 }
  0x1c   :  { %vm56_vm5 = vcmp.lt.s32.totalorder %v54_v24, %v55_v25 }
  0x1d   :  { %v57_v26 = vsel %vm56_vm5, %v54_v24, %v55_v25 }
  0x1e   :  { %v58_v27 = vrot.slane %v57_v26, 1 }
  0x20   :  { %vm59_vm6 = vcmp.lt.s32.totalorder %v57_v26, %v58_v27 }
  0x21   :  { %v60_v29 = vsel %vm59_vm6, %v57_v26, %v58_v27 }
  0x22   :  { %vm64_vm8 = vcmp.eq.s32.totalorder %v60_v29, %v63_v28  ;;  %62 = vst.msk [vmem:[#allocation7] sm:$0x1] %vm61_vm7, %v60_v29 }
  0x23   :  { %v65_v31 = vsel %vm64_vm8, 1, %v213_v30  ;;  %133 = dma.vmem_to_hbm [thread:$0]  %s129_s29, 16, %s131_s3, [#allocation3]  }
  0x24   :  { %v66_v32 = vsel %vm61_vm7, %v65_v31, 0 }
  0x25   :  { %v68_v33 = vshrl.u32 %v66_v32, 16  ;;  %v67_v35 = vand.u32 65535, %v66_v32 }
  0x27   :  { %v70_v34 = vcvt.s32.f32 %v68_v33  ;;  %v69_v36 = vcvt.s32.f32 %v67_v35 }
  0x29   :  { %73 = vadd.xlane.f32.xlu0 %v70_v34 }
  0x31   :  { %71 = vadd.xlane.f32.xlu0 %v69_v36 }
  0x7c   :  { %v94_v38 = vpop.xlane.xlu1 %93 }
  0x7d   :  { %v95_v39 = vrot.slane %v94_v38, 4 }
  0x7f   :  { %v96_v41 = vadd.f32 %v95_v39, %v94_v38 }
  0x81   :  { %v97_v46 = vrot.slane %v96_v41, 2 }
  0x83   :  { %v98_v49 = vadd.f32 %v97_v46, %v96_v41 }
  0x85   :  { %v99_v52 = vrot.slane %v98_v49, 1 }
  0x87   :  { %v100_v55 = vadd.f32 %v99_v52, %v98_v49 }
  0x9c   :  { %v74_v37 = vpop.xlane.xlu0 %73 }
  0x9d   :  { %v76_v40 = vcvt.f32.s32 %v74_v37 }
  0x9f   :  { %v77_v43 = vshll.u32 %v76_v40, 16 }
  0xa4   :  { %v72_v42 = vpop.xlane.xlu0 %71 }
  0xa5   :  { %v75_v44 = vcvt.f32.s32 %v72_v42 }
  0xa7   :  { %v78_v45 = vadd.s32 %v77_v43, %v75_v44 }
  0xa9   :  { %v79_v47 = vrot.slane %v78_v45, 4 }
  0xab   :  { %v80_v48 = vadd.s32 %v79_v47, %v78_v45 }
  0xad   :  { %v81_v50 = vrot.slane %v80_v48, 2 }
  0xaf   :  { %v82_v51 = vadd.s32 %v81_v50, %v80_v48 }
  0xb1   :  { %v83_v53 = vrot.slane %v82_v51, 1 }
  0xb3   :  { %v84_v54 = vadd.s32 %v83_v53, %v82_v51 }
  0xb5   :  { %150 = vpush %v84_v54 }
  0xb6   :  { %152 = vpush %v100_v55 }
  0xe6   :  { %s151_s13 = spop %150 }
  0xe7   :  { %87 = sst [smem:[#allocation5]] %s151_s13  ;;  %s153_s14 = spop %152 }
  0xe8   :  { %122 = dma.smem_to_hbm %s215_s15, 16, %s120_s12, [#allocation6]  }
  0xe9   :  { %104 = sst [smem:[#allocation2]] %s153_s14 }
  0xea   :  { %113 = dma.smem_to_hbm %s216_s16, 16, %s111_s9, [#allocation4]  }
  0xeb   :  { %207 = dma.done.wait [#allocation4], 16  }
  0xec   :  { %208 = vsyncadd [#allocation4], 4294967280 }
  0xed   :  { %209 = dma.done.wait [#allocation6], 16  }
  0xee   :  { %210 = vsyncadd [#allocation6], 4294967280 }
  0xef   :  { %211 = dma.done.wait [#allocation3], 16  }
  0xf0   :  { %212 = vsyncadd [#allocation3], 4294967280 }
  0xf1   :  { %146 = sfence }
  0xf2   :  { %147 = vsyncpa [#allocation3], 1 }
  0xf3   :  { %148 = vsyncpa [#allocation4], 1 }
  0xf4   :  { %149 = vsyncpa [#allocation6], 1 }

</bundles_post_ra>
